<compile_context>
chip_gen: v5e
topology: v5e:2x2
jax: 0.10.0
libtpu: 0.0.40
codegen_flags: <defaults>
</compile_context>

<pallas_src>
import jax
import jax.numpy as jnp
from jax.experimental import pallas as pl
from jax.experimental.pallas import tpu as pltpu

LANES = 128          # lane width of a vreg
MAX_BLOCK_ROWS = 2048  # 2048 x 128 x 4B = 1 MiB per block (in + out, double-buffered: 4 MiB)


def squarenet_kernel(p_ref, x_ref, o_ref):
    # p_ref: (10,) f32 in SMEM:
    #   [0]=W1[0,0] [1]=W1[1,0] [2]=b1[0] [3]=b1[1]
    #   [4]=W2[0,0] [5]=W2[0,1] [6]=W2[1,0] [7]=W2[1,1]
    #   [8]=W3[0,0] [9]=W3[0,1]
    # x_ref / o_ref: (TR, 128) f32 in VMEM — batch elements laid out on
    # sublanes x lanes. All math is elementwise (VPU) + sigmoid (EUP).
    x = x_ref[...]

    w1_0 = p_ref[0]
    w1_1 = p_ref[1]
    b1_0 = p_ref[2]
    b1_1 = p_ref[3]
    w2_00 = p_ref[4]
    w2_01 = p_ref[5]
    w2_10 = p_ref[6]
    w2_11 = p_ref[7]
    w3_0 = p_ref[8]
    w3_1 = p_ref[9]

    # fc1 (bias) + sigmoid
    h1_0 = jax.nn.sigmoid(x * w1_0 + b1_0)
    h1_1 = jax.nn.sigmoid(x * w1_1 + b1_1)
    # fc2 (no bias) + sigmoid
    h2_0 = jax.nn.sigmoid(h1_0 * w2_00 + h1_1 * w2_01)
    h2_1 = jax.nn.sigmoid(h1_0 * w2_10 + h1_1 * w2_11)
    # fc3 (no bias), scaled sigmoid
    o_ref[...] = 2.25 * jax.nn.sigmoid(h2_0 * w3_0 + h2_1 * w3_1)


def squarenet_forward(x, w1, b1, w2, w3):
    """x: (N, 1) f32. w1:(2,1), b1:(2,), w2:(2,2), w3:(1,2) — PyTorch Linear layout."""
    n = x.shape[0]
    x_flat = jnp.reshape(x, (-1,)).astype(jnp.float32)

    # Batch-on-lanes layout: pad N up to a (rows, 128) tile, rows multiple of 8.
    rows = max(pl.cdiv(n, LANES), 1)
    rows = ((rows + 7) // 8) * 8
    block_rows = min(MAX_BLOCK_ROWS, rows)
    rows = ((rows + block_rows - 1) // block_rows) * block_rows
    total = rows * LANES

    x_p = jnp.zeros((total,), jnp.float32).at[:n].set(x_flat).reshape(rows, LANES)

    # The 10 real parameters, packed for SMEM.
    params = jnp.concatenate(
        [
            jnp.reshape(w1, (-1,)),  # W1[0,0], W1[1,0]
            jnp.reshape(b1, (-1,)),  # b1[0], b1[1]
            jnp.reshape(w2, (-1,)),  # W2[0,0], W2[0,1], W2[1,0], W2[1,1]
            jnp.reshape(w3, (-1,)),  # W3[0,0], W3[0,1]
        ]
    ).astype(jnp.float32)

    grid = (rows // block_rows,)

    out = pl.pallas_call(
        squarenet_kernel,
        out_shape=jax.ShapeDtypeStruct((rows, LANES), jnp.float32),
        grid=grid,
        in_specs=[
            pl.BlockSpec(memory_space=pltpu.MemorySpace.SMEM),       # params (whole array)
            pl.BlockSpec((block_rows, LANES), lambda i: (i, 0)),     # x tile
        ],
        out_specs=pl.BlockSpec((block_rows, LANES), lambda i: (i, 0)),
        compiler_params=pltpu.CompilerParams(
            dimension_semantics=("parallel",),   # v7x: shard batch tiles across 2 TCs
        ),
        cost_estimate=pl.CostEstimate(
            flops=10 * total,
            transcendentals=3 * total,
            bytes_accessed=8 * total + 4 * 10,
        ),
    )(params, x_p)

    return out.reshape(-1)[:n].reshape(n, 1)


def squarenet_ref(x, w1, b1, w2, w3):
    h1 = jax.nn.sigmoid(x @ w1.T + b1)
    h2 = jax.nn.sigmoid(h1 @ w2.T)
    return 2.25 * jax.nn.sigmoid(h2 @ w3.T)


if __name__ == "__main__":
    key = jax.random.PRNGKey(0)
    kx, k1, kb, k2, k3 = jax.random.split(key, 5)

    # Deterministic synthetic parameters (kaiming-normal-ish scale).
    w1 = jax.random.normal(k1, (2, 1), jnp.float32) * (2.0 ** 0.5)   # fc1.weight
    b1 = jax.random.normal(kb, (2,), jnp.float32) * 0.1              # fc1.bias
    w2 = jax.random.normal(k2, (2, 2), jnp.float32) * 1.0            # fc2.weight
    w3 = jax.random.normal(k3, (1, 2), jnp.float32) * 1.0            # fc3.weight

    ok = True
    for n in (8, 37):   # exercise exact tile fit and ragged padding
        x = jax.random.normal(jax.random.fold_in(kx, n), (n, 1), jnp.float32)
        y = squarenet_forward(x, w1, b1, w2, w3)
        y = jax.block_until_ready(y)
        y_ref = squarenet_ref(x, w1, b1, w2, w3)
        assert y.shape == (n, 1), y.shape
        assert jnp.allclose(y, y_ref, atol=1e-5, rtol=1e-5), (n, y, y_ref)
        ok = ok and True

    if ok:
        print("KERNEL_OK")
</pallas_src>

<mosaic_0001>
module attributes {stable_mosaic.version = 11 : i64} {
  func.func @squarenet_kernel(%arg0: i32, %arg1: memref<10xf32, #tpu.memory_space<smem>>, %arg2: memref<8x128xf32, #tpu.memory_space<vmem>>, %arg3: memref<8x128xf32, #tpu.memory_space<vmem>>) attributes {dimension_semantics = [#tpu.dimension_semantics<parallel>], iteration_bounds = array<i64: 1>, scalar_prefetch = 0 : i64, scratch_operands = 0 : i64, tpu.core_type = #tpu.core_type<tc>, window_params = [{transform_indices = @transform_0, window_bounds = array<i64: 10>}, {transform_indices = @transform_1, window_bounds = array<i64: 8, 128>}, {transform_indices = @transform_2, window_bounds = array<i64: 8, 128>}]} {
    %c0 = arith.constant 0 : index
    %c0_0 = arith.constant 0 : index
    %0 = vector.load %arg2[%c0, %c0_0] : memref<8x128xf32, #tpu.memory_space<vmem>>, vector<8x128xf32>
    %c0_1 = arith.constant 0 : index
    %1 = memref.load %arg1[%c0_1] : memref<10xf32, #tpu.memory_space<smem>>
    %c1 = arith.constant 1 : index
    %2 = memref.load %arg1[%c1] : memref<10xf32, #tpu.memory_space<smem>>
    %c2 = arith.constant 2 : index
    %3 = memref.load %arg1[%c2] : memref<10xf32, #tpu.memory_space<smem>>
    %c3 = arith.constant 3 : index
    %4 = memref.load %arg1[%c3] : memref<10xf32, #tpu.memory_space<smem>>
    %c4 = arith.constant 4 : index
    %5 = memref.load %arg1[%c4] : memref<10xf32, #tpu.memory_space<smem>>
    %c5 = arith.constant 5 : index
    %6 = memref.load %arg1[%c5] : memref<10xf32, #tpu.memory_space<smem>>
    %c6 = arith.constant 6 : index
    %7 = memref.load %arg1[%c6] : memref<10xf32, #tpu.memory_space<smem>>
    %c7 = arith.constant 7 : index
    %8 = memref.load %arg1[%c7] : memref<10xf32, #tpu.memory_space<smem>>
    %c8 = arith.constant 8 : index
    %9 = memref.load %arg1[%c8] : memref<10xf32, #tpu.memory_space<smem>>
    %c9 = arith.constant 9 : index
    %10 = memref.load %arg1[%c9] : memref<10xf32, #tpu.memory_space<smem>>
    %11 = vector.broadcast %1 : f32 to vector<8x128xf32>
    %12 = arith.mulf %0, %11 : vector<8x128xf32>
    %13 = vector.broadcast %3 : f32 to vector<8x128xf32>
    %14 = arith.addf %12, %13 : vector<8x128xf32>
    %15 = arith.negf %14 : vector<8x128xf32>
    %16 = math.exp %15 : vector<8x128xf32>
    %cst = arith.constant 1.000000e+00 : f32
    %17 = vector.broadcast %cst : f32 to vector<8x128xf32>
    %18 = arith.addf %17, %16 : vector<8x128xf32>
    %19 = arith.divf %17, %18 : vector<8x128xf32>
    %20 = vector.broadcast %2 : f32 to vector<8x128xf32>
    %21 = arith.mulf %0, %20 : vector<8x128xf32>
    %22 = vector.broadcast %4 : f32 to vector<8x128xf32>
    %23 = arith.addf %21, %22 : vector<8x128xf32>
    %24 = arith.negf %23 : vector<8x128xf32>
    %25 = math.exp %24 : vector<8x128xf32>
    %cst_2 = arith.constant 1.000000e+00 : f32
    %26 = vector.broadcast %cst_2 : f32 to vector<8x128xf32>
    %27 = arith.addf %26, %25 : vector<8x128xf32>
    %28 = arith.divf %26, %27 : vector<8x128xf32>
    %29 = vector.broadcast %5 : f32 to vector<8x128xf32>
    %30 = arith.mulf %19, %29 : vector<8x128xf32>
    %31 = vector.broadcast %6 : f32 to vector<8x128xf32>
    %32 = arith.mulf %28, %31 : vector<8x128xf32>
    %33 = arith.addf %30, %32 : vector<8x128xf32>
    %34 = arith.negf %33 : vector<8x128xf32>
    %35 = math.exp %34 : vector<8x128xf32>
    %cst_3 = arith.constant 1.000000e+00 : f32
    %36 = vector.broadcast %cst_3 : f32 to vector<8x128xf32>
    %37 = arith.addf %36, %35 : vector<8x128xf32>
    %38 = arith.divf %36, %37 : vector<8x128xf32>
    %39 = vector.broadcast %7 : f32 to vector<8x128xf32>
    %40 = arith.mulf %19, %39 : vector<8x128xf32>
    %41 = vector.broadcast %8 : f32 to vector<8x128xf32>
    %42 = arith.mulf %28, %41 : vector<8x128xf32>
    %43 = arith.addf %40, %42 : vector<8x128xf32>
    %44 = arith.negf %43 : vector<8x128xf32>
    %45 = math.exp %44 : vector<8x128xf32>
    %cst_4 = arith.constant 1.000000e+00 : f32
    %46 = vector.broadcast %cst_4 : f32 to vector<8x128xf32>
    %47 = arith.addf %46, %45 : vector<8x128xf32>
    %48 = arith.divf %46, %47 : vector<8x128xf32>
    %49 = vector.broadcast %9 : f32 to vector<8x128xf32>
    %50 = arith.mulf %38, %49 : vector<8x128xf32>
    %51 = vector.broadcast %10 : f32 to vector<8x128xf32>
    %52 = arith.mulf %48, %51 : vector<8x128xf32>
    %53 = arith.addf %50, %52 : vector<8x128xf32>
    %54 = arith.negf %53 : vector<8x128xf32>
    %55 = math.exp %54 : vector<8x128xf32>
    %cst_5 = arith.constant 1.000000e+00 : f32
    %56 = vector.broadcast %cst_5 : f32 to vector<8x128xf32>
    %57 = arith.addf %56, %55 : vector<8x128xf32>
    %58 = arith.divf %56, %57 : vector<8x128xf32>
    %cst_6 = arith.constant 2.250000e+00 : f32
    %59 = vector.broadcast %cst_6 : f32 to vector<8x128xf32>
    %60 = arith.mulf %59, %58 : vector<8x128xf32>
    %c0_7 = arith.constant 0 : index
    %c0_8 = arith.constant 0 : index
    %61 = vector.load %arg3[%c0_7, %c0_8] : memref<8x128xf32, #tpu.memory_space<vmem>>, vector<8x128xf32>
    tpu.vector_store %arg3[%c0_7, %c0_8], %60 {strides = array<i32>} : memref<8x128xf32, #tpu.memory_space<vmem>>, vector<8x128xf32>,
    return
  }
  func.func @transform_0(%arg0: i32) -> i32 {
    %c0_i32 = arith.constant 0 : i32
    %c0_i32_0 = arith.constant 0 : i32
    return %c0_i32 : i32
  }
  func.func @transform_1(%arg0: i32) -> (i32, i32) {
    %c0_i32 = arith.constant 0 : i32
    %c0_i32_0 = arith.constant 0 : i32
    return %arg0, %c0_i32 : i32, i32
  }
  func.func @transform_2(%arg0: i32) -> (i32, i32) {
    %c0_i32 = arith.constant 0 : i32
    %c0_i32_0 = arith.constant 0 : i32
    return %arg0, %c0_i32 : i32, i32
  }
}

</mosaic_0001>

<bundles_post_ra>
// kernel: tpu_custom_call.1
= control target key start
LH: loop header
LB: loop body
LE: loop exit
PB: predicated region body
PF: predicated region fallthrough
CT: control target
= control target key end

     0   :  { %7 = vsyncpa [#allocation5], 0  ;;  %s333_s0 = inlined_call_operand.hbm [shape: f32[10], index: 0, kind: input, shape index: {}]   ;;  %s334_s1 = inlined_call_operand.hbm [shape: f32[8,128], index: 1, kind: input, shape index: {}]   ;;  %s335_s2 = inlined_call_operand.hbm [shape: f32[8,128], index: 2, kind: output, shape index: {}]  }
   0x1   :  { %8 = vsyncpa [#allocation3], 0 }
   0x2   :  { %9 = vsyncpa [#allocation4], 0  ;;  %s15_s11 = sshll.u32 %s333_s0, 4  ;;  %s24_s14 = sshll.u32 %s334_s1, 4  ;;  %s16_s11 = int_to_ptr.hbm [resolvable:$true] %s15_s11  ;;  %s25_s14 = int_to_ptr.hbm [resolvable:$true] %s24_s14 }
   0x3   :  { %s291_s15 = smov [#allocation2]   ;;  %s292_s16 = smov [#allocation6]  }
   0x4   :  { %18 = dma.hbm_to_smem %s16_s11, 16, %s291_s15, [#allocation5]  }
   0x5   :  { %s26_s17 = sshll.u32 %s292_s16, 4  ;;  %s27_s17 = int_to_ptr.vmem [resolvable:$true] %s26_s17 }
   0x6   :  { %29 = dma.hbm_to_vmem [thread:$0]  %s25_s14, 128, %s27_s17, [#allocation3]  }
   0x7   :  { %285 = dma.done.wait [#allocation5], 16  }
   0x8   :  { %286 = vsyncadd [#allocation5], 4294967280 }
   0x9   :  { %287 = dma.done.wait [#allocation3], 128  }
   0xa   :  { %288 = vsyncadd [#allocation3], 4294967168 }
   0xb   :  { %38 = sfence }
   0xc   :  { %s40_s18 = sld [smem:[#allocation2]]  ;;  %v39_v0 = vld [vmem:[#allocation6] sm:$0xff]  ;;  %s293_s26 = smov [#allocation7]  }
   0xd   :  { %s188_s19 = sld [smem:[#allocation2 + $0x1]]  ;;  %s175_s27 = sshll.u32 %s293_s26, 4  ;;  %s176_s27 = int_to_ptr.vmem [resolvable:$true] %s175_s27 }
   0xe   :  { %s189_s0 = sld [smem:[#allocation2 + $0x2]]  ;;  %s177_s30 = sshll.u32 %s335_s2, 4  ;;  %s178_s30 = int_to_ptr.hbm [resolvable:$true] %s177_s30 }
   0xf   :  { %s190_s20 = sld [smem:[#allocation2 + $0x3]] }
  0x10   :  { %s315_s1 = sld [smem:[#allocation2 + $0x4]] }
  0x11   :  { %s317_s21 = sld [smem:[#allocation2 + $0x5]] }
  0x12   :  { %v50_v1 = vstv %s40_s18  ;;  %s319_s22 = sld [smem:[#allocation2 + $0x6]] }
  0x13   :  { %v51_v2 = vmul.f32 %v50_v1, %v39_v0  ;;  %v73_v3 = vstv %s188_s19  ;;  %s321_s23 = sld [smem:[#allocation2 + $0x7]] }
  0x14   :  { %v52_v4 = vstv %s189_s0  ;;  %v74_v5 = vmul.f32 %v73_v3, %v39_v0  ;;  %s327_s24 = sld [smem:[#allocation2 + $0x8]] }
  0x15   :  { %v53_v6 = vadd.f32 %v52_v4, %v51_v2  ;;  %v75_v7 = vstv %s190_s20  ;;  %s196_s25 = sld [smem:[#allocation2 + $0x9]] }
  0x16   :  { %v76_v8 = vadd.f32 %v75_v7, %v74_v5  ;;  %v96_v31 = vstv %s315_s1 }
  0x17   :  { %v197_v9 = vmul.f32 -1.442695, %v53_v6  ;;  %v98_v34 = vstv %s317_s21 }
  0x18   :  { %v198_v10 = vmul.f32 -1.442695, %v76_v8  ;;  %v120_v32 = vstv %s319_s22 }
  0x19   :  { %205 = vpow2.f32 %v197_v9  ;;  %v122_v35 = vstv %s321_s23 }
  0x1a   :  { %207 = vpow2.f32 %v198_v10  ;;  %v144_v3 = vstv %s327_s24 }
  0x1b   :  { %v146_v5 = vstv %s196_s25 }
  0x1f   :  { %v206_v11 = vpop.eup %205 }
  0x20   :  { %v208_v12 = vpop.eup %207  ;;  %v57_v13 = vadd.f32 1.0, %v206_v11 }
  0x21   :  { %v80_v14 = vadd.f32 1.0, %v208_v12 }
  0x22   :  { %209 = vrcp.f32 %v57_v13  ;;  %vm63_vm0 = vweird.f32 %v57_v13  ;;  %v69_v18 = vand.u32 2147483648, %v57_v13  ;;  %v67_v21 = vand.u32 2147483647, %v57_v13 }
  0x23   :  { %211 = vrcp.f32 %v80_v14  ;;  %v92_v22 = vand.u32 2147483648, %v80_v14  ;;  %vm86_vm2 = vweird.f32 %v80_v14  ;;  %v90_v24 = vand.u32 2147483647, %v80_v14 }
  0x24   :  { %v70_v26 = vor.u32 1.1754944e-38, %v69_v18  ;;  %vm68_vm5 = vcmp.eq.f32.partialorder %v67_v21, 8.507059e+37 }
  0x25   :  { %v93_v29 = vor.u32 1.1754944e-38, %v92_v22  ;;  %vm91_vm7 = vcmp.eq.f32.partialorder %v90_v24, 8.507059e+37 }
  0x28   :  { %v210_v15 = vpop.eup %209 }
  0x29   :  { %v212_v16 = vpop.eup %211  ;;  %v59_v17 = vmul.f32 %v210_v15, %v57_v13  ;;  %vm64_vm1 = vweird.f32 %v210_v15 }
  0x2a   :  { %v82_v19 = vmul.f32 %v212_v16, %v80_v14  ;;  %vm87_vm3 = vweird.f32 %v212_v16  ;;  %vm65_vm4 = vmor %vm63_vm0, %vm64_vm1 }
  0x2b   :  { %v60_v20 = vsub.f32 1.0, %v59_v17  ;;  %vm88_vm6 = vmor %vm86_vm2, %vm87_vm3 }
  0x2c   :  { %v83_v23 = vsub.f32 1.0, %v82_v19 }
  0x2d   :  { %v61_v25 = vmul.f32 %v210_v15, %v60_v20 }
  0x2e   :  { %v84_v27 = vmul.f32 %v212_v16, %v83_v23 }
  0x2f   :  { %v62_v28 = vadd.f32 %v210_v15, %v61_v25 }
  0x30   :  { %v85_v30 = vadd.f32 %v212_v16, %v84_v27 }
  0x31   :  { %v66_v33 = vsel %vm65_vm4, %v210_v15, %v62_v28 }
  0x32   :  { %v71_v36 = vsel %vm68_vm5, %v70_v26, %v66_v33  ;;  %v89_v37 = vsel %vm88_vm6, %v212_v16, %v85_v30 }
  0x33   :  { %v94_v38 = vsel %vm91_vm7, %v93_v29, %v89_v37  ;;  %v97_v39 = vmul.f32 %v96_v31, %v71_v36  ;;  %v121_v40 = vmul.f32 %v120_v32, %v71_v36 }
  0x34   :  { %v99_v41 = vmul.f32 %v98_v34, %v94_v38  ;;  %v123_v42 = vmul.f32 %v122_v35, %v94_v38 }
  0x36   :  { %v100_v43 = vadd.f32 %v99_v41, %v97_v39  ;;  %v124_v44 = vadd.f32 %v123_v42, %v121_v40 }
  0x38   :  { %v199_v45 = vmul.f32 -1.442695, %v100_v43  ;;  %v200_v46 = vmul.f32 -1.442695, %v124_v44 }
  0x3a   :  { %213 = vpow2.f32 %v199_v45 }
  0x3b   :  { %215 = vpow2.f32 %v200_v46 }
  0x40   :  { %v214_v47 = vpop.eup %213 }
  0x41   :  { %v216_v48 = vpop.eup %215  ;;  %v104_v49 = vadd.f32 1.0, %v214_v47 }
  0x42   :  { %v128_v50 = vadd.f32 1.0, %v216_v48 }
  0x43   :  { %217 = vrcp.f32 %v104_v49  ;;  %vm110_vm8 = vweird.f32 %v104_v49  ;;  %v116_v54 = vand.u32 2147483648, %v104_v49  ;;  %v114_v57 = vand.u32 2147483647, %v104_v49 }
  0x44   :  { %219 = vrcp.f32 %v128_v50  ;;  %v140_v58 = vand.u32 2147483648, %v128_v50  ;;  %vm134_vm10 = vweird.f32 %v128_v50  ;;  %v138_v60 = vand.u32 2147483647, %v128_v50 }
  0x45   :  { %v117_v62 = vor.u32 1.1754944e-38, %v116_v54  ;;  %vm115_vm13 = vcmp.eq.f32.partialorder %v114_v57, 8.507059e+37 }
  0x46   :  { %v141_v1 = vor.u32 1.1754944e-38, %v140_v58  ;;  %vm139_vm15 = vcmp.eq.f32.partialorder %v138_v60, 8.507059e+37 }
  0x49   :  { %v218_v51 = vpop.eup %217 }
  0x4a   :  { %v220_v52 = vpop.eup %219  ;;  %v106_v53 = vmul.f32 %v218_v51, %v104_v49  ;;  %vm111_vm9 = vweird.f32 %v218_v51 }
  0x4b   :  { %v130_v55 = vmul.f32 %v220_v52, %v128_v50  ;;  %vm135_vm11 = vweird.f32 %v220_v52  ;;  %vm112_vm12 = vmor %vm110_vm8, %vm111_vm9 }
  0x4c   :  { %v107_v56 = vsub.f32 1.0, %v106_v53  ;;  %vm136_vm14 = vmor %vm134_vm10, %vm135_vm11 }
  0x4d   :  { %v131_v59 = vsub.f32 1.0, %v130_v55 }
  0x4e   :  { %v108_v61 = vmul.f32 %v218_v51, %v107_v56 }
  0x4f   :  { %v132_v63 = vmul.f32 %v220_v52, %v131_v59 }
  0x50   :  { %v109_v0 = vadd.f32 %v218_v51, %v108_v61 }
  0x51   :  { %v133_v2 = vadd.f32 %v220_v52, %v132_v63 }
  0x52   :  { %v113_v4 = vsel %vm112_vm12, %v218_v51, %v109_v0 }
  0x53   :  { %v118_v6 = vsel %vm115_vm13, %v117_v62, %v113_v4  ;;  %v137_v7 = vsel %vm136_vm14, %v220_v52, %v133_v2 }
  0x54   :  { %v142_v8 = vsel %vm139_vm15, %v141_v1, %v137_v7  ;;  %v145_v9 = vmul.f32 %v144_v3, %v118_v6 }
  0x55   :  { %v147_v10 = vmul.f32 %v146_v5, %v142_v8 }
  0x57   :  { %v148_v11 = vadd.f32 %v147_v10, %v145_v9 }
  0x59   :  { %v201_v12 = vmul.f32 -1.442695, %v148_v11 }
  0x5b   :  { %221 = vpow2.f32 %v201_v12 }
  0x61   :  { %v222_v13 = vpop.eup %221 }
  0x62   :  { %v152_v14 = vadd.f32 1.0, %v222_v13 }
  0x64   :  { %223 = vrcp.f32 %v152_v14  ;;  %v164_v17 = vand.u32 2147483648, %v152_v14  ;;  %vm158_vm0 = vweird.f32 %v152_v14  ;;  %v162_v19 = vand.u32 2147483647, %v152_v14 }
  0x66   :  { %v165_v21 = vor.u32 1.1754944e-38, %v164_v17  ;;  %vm163_vm3 = vcmp.eq.f32.partialorder %v162_v19, 8.507059e+37 }
  0x6a   :  { %v224_v15 = vpop.eup %223 }
  0x6b   :  { %v154_v16 = vmul.f32 %v224_v15, %v152_v14  ;;  %vm159_vm1 = vweird.f32 %v224_v15 }
  0x6c   :  { %vm160_vm2 = vmor %vm158_vm0, %vm159_vm1 }
  0x6d   :  { %v155_v18 = vsub.f32 1.0, %v154_v16 }
  0x6f   :  { %v156_v20 = vmul.f32 %v224_v15, %v155_v18 }
  0x71   :  { %v157_v22 = vadd.f32 %v224_v15, %v156_v20 }
  0x73   :  { %v161_v23 = vsel %vm160_vm2, %v224_v15, %v157_v22 }
  0x74   :  { %v166_v24 = vsel %vm163_vm3, %v165_v21, %v161_v23 }
  0x75   :  { %v168_v25 = vmul.f32 2.25, %v166_v24 }
  0x77   :  { %169 = vst [vmem:[#allocation7] sm:$0xff] %v168_v25 }
  0x78   :  { %180 = dma.vmem_to_hbm [thread:$0]  %s176_s27, 128, %s178_s30, [#allocation4]  }
  0x79   :  { %289 = dma.done.wait [#allocation4], 128  }
  0x7a   :  { %290 = vsyncadd [#allocation4], 4294967168 }
  0x7b   :  { %185 = vsyncpa [#allocation3], 1 }
  0x7c   :  { %186 = vsyncpa [#allocation4], 1 }
  0x7d   :  { %187 = vsyncpa [#allocation5], 1 }

</bundles_post_ra>
